<compile_context>
chip_gen: v6e
topology: v6e:2x2x1
jax: 0.10.0
libtpu: 0.0.40
codegen_flags: <defaults>
</compile_context>

<pallas_src>
import jax
import jax.numpy as jnp
from jax import lax
from jax.experimental import pallas as pl
from jax.experimental.pallas import tpu as pltpu


def _clipped_critic_kernel(xu_ref, w1_ref, w2_ref, w3t_ref, b12_ref, b3t_ref,
                           out_ref):
    b12 = b12_ref[...]                        # [2, 2H]
    b1 = b12[0:1, :]                          # fused layer-1 bias [1, 2H]
    b2 = b12[1:2, :]                          # fused layer-2 bias [1, 2H]

    # Layer 1 (both heads fused): relu(xu @ W1 + b1)
    h = jnp.dot(xu_ref[...], w1_ref[...],
                preferred_element_type=jnp.float32) + b1
    h = jnp.maximum(h, 0.0)

    # Layer 2 (block-diagonal): relu(h @ W2 + b2)
    h = jnp.dot(h, w2_ref[...], preferred_element_type=jnp.float32) + b2
    h = jnp.maximum(h, 0.0)

    # Layer 3, computed transposed so the output is lane-dense along batch:
    #   q[2*out, bm] = W3t[2*out, 2H] . h[bm, 2H]^T
    q = lax.dot_general(w3t_ref[...], h,
                        dimension_numbers=(((1,), (1,)), ((), ())),
                        preferred_element_type=jnp.float32)
    q = q + b3t_ref[...]                      # [2*out, 1] broadcasts over lanes
    out_ref[...] = q.astype(out_ref.dtype)


def pack_params(params):
    """Pack the 12 per-layer tensors into 5 fused slabs. Call once per
    parameter update, NOT per forward call."""
    hidden = params["w1"].shape[1]
    out_dim = params["w3"].shape[1]

    # Layer 1: concat heads along the output axis.
    w1 = jnp.concatenate([params["w1"], params["w4"]], axis=1)       # [in, 2H]

    # Layer 2: block-diagonal.
    w2 = jnp.zeros((2 * hidden, 2 * hidden), jnp.float32)
    w2 = w2.at[:hidden, :hidden].set(params["w2"])
    w2 = w2.at[hidden:, hidden:].set(params["w5"])

    # Layer 3: block-diagonal, stored pre-transposed -> [2*out, 2H].
    w3t = jnp.zeros((2 * out_dim, 2 * hidden), jnp.float32)
    w3t = w3t.at[:out_dim, :hidden].set(params["w3"].T)
    w3t = w3t.at[out_dim:, hidden:].set(params["w6"].T)

    # Fused biases: layers 1/2 share width 2H -> one [2, 2H] slab.
    b12 = jnp.concatenate(
        [jnp.concatenate([params["b1"], params["b4"]], axis=1),
         jnp.concatenate([params["b2"], params["b5"]], axis=1)], axis=0)
    # Layer-3 bias, transposed to match the [2*out, bm] output slab.
    b3t = jnp.concatenate([params["b3"], params["b6"]], axis=1).T    # [2*out,1]

    return {"w1": w1, "w2": w2, "w3t": w3t, "b12": b12, "b3t": b3t,
            "out_dim": out_dim}


def _round_up(x, m):
    return ((x + m - 1) // m) * m


def _select_tile(batch):
    """Batch-tile rows. Small batches: one block (launch-dominated, splitting
    only adds step overhead). Larger batches: >=2 lane-aligned (x128) tiles so
    the 'parallel' grid axis can shard across both v7x TensorCores, capped at
    2048 rows to amortize per-step overhead while staying far under every
    generation's default scoped-VMEM limit."""
    if batch <= 256:
        return _round_up(max(batch, 8), 8)
    bm = _round_up(pl.cdiv(batch, 2), 128)
    return min(bm, 2048)


def clipped_critic_forward(state, action, packed):
    batch = state.shape[0]
    out_dim = packed["out_dim"]
    two_out = 2 * out_dim

    # Single lane-padded input stream (removes one DMA stream + one matmul).
    xu = jnp.concatenate([state, action], axis=1).astype(jnp.float32)
    in_dim = xu.shape[1]

    bm = _select_tile(batch)
    padded = _round_up(batch, bm)
    if padded != batch:
        xu = jnp.pad(xu, ((0, padded - batch), (0, 0)))
    grid = (padded // bm,)

    def rows(i):
        return (i, 0)

    def cols(i):
        return (0, i)

    def fixed(i):
        return (0, 0)

    out = pl.pallas_call(
        _clipped_critic_kernel,
        out_shape=jax.ShapeDtypeStruct((two_out, padded), jnp.float32),
        grid=grid,
        in_specs=[
            pl.BlockSpec((bm, in_dim), rows),
            pl.BlockSpec(packed["w1"].shape, fixed),
            pl.BlockSpec(packed["w2"].shape, fixed),
            pl.BlockSpec(packed["w3t"].shape, fixed),
            pl.BlockSpec(packed["b12"].shape, fixed),
            pl.BlockSpec(packed["b3t"].shape, fixed),
        ],
        out_specs=pl.BlockSpec((two_out, bm), cols),
        compiler_params=pltpu.CompilerParams(
            dimension_semantics=("parallel",)),
    )(xu, packed["w1"], packed["w2"], packed["w3t"],
      packed["b12"], packed["b3t"])

    # Slice ROWS of the lane-dense slab, then transpose to (batch, out_dim).
    q1 = out[:out_dim, :batch].T
    q2 = out[out_dim:, :batch].T
    return q1, q2


def init_params(key, input_dim, output_dim, hidden_size):
    """Deterministic init matching nn.Linear shapes (stored as [in, out])."""
    dims = [
        (input_dim, hidden_size),    # linear1
        (hidden_size, hidden_size),  # linear2
        (hidden_size, output_dim),   # linear3
        (input_dim, hidden_size),    # linear4
        (hidden_size, hidden_size),  # linear5
        (hidden_size, output_dim),   # linear6
    ]
    params = {}
    keys = jax.random.split(key, 2 * len(dims))
    for i, (fan_in, fan_out) in enumerate(dims):
        bound = 1.0 / (fan_in ** 0.5)
        w = jax.random.uniform(keys[2 * i], (fan_in, fan_out),
                               minval=-bound, maxval=bound, dtype=jnp.float32)
        b = jax.random.uniform(keys[2 * i + 1], (1, fan_out),
                               minval=-bound, maxval=bound, dtype=jnp.float32)
        params[f"w{i + 1}"] = w
        params[f"b{i + 1}"] = b
    return params


def reference_forward(state, action, params):
    xu = jnp.concatenate([state, action], axis=1)
    x1 = jnp.maximum(xu @ params["w1"] + params["b1"], 0.0)
    x1 = jnp.maximum(x1 @ params["w2"] + params["b2"], 0.0)
    x1 = x1 @ params["w3"] + params["b3"]
    x2 = jnp.maximum(xu @ params["w4"] + params["b4"], 0.0)
    x2 = jnp.maximum(x2 @ params["w5"] + params["b5"], 0.0)
    x2 = x2 @ params["w6"] + params["b6"]
    return x1, x2


if __name__ == "__main__":
    batch = 8
    state_dim = 12
    action_dim = 4
    input_dim = state_dim + action_dim
    hidden_size = 32
    output_dim = 1

    key = jax.random.PRNGKey(0)
    k_state, k_action, k_params = jax.random.split(key, 3)

    state = jax.random.normal(k_state, (batch, state_dim), dtype=jnp.float32)
    action = jax.random.normal(k_action, (batch, action_dim), dtype=jnp.float32)
    params = init_params(k_params, input_dim, output_dim, hidden_size)

    packed = pack_params(params)                    # one-time packing
    q1, q2 = clipped_critic_forward(state, action, packed)
    jax.block_until_ready((q1, q2))

    # Correctness check against an unfused pure-JAX reference.
    r1, r2 = reference_forward(state, action, params)
    assert q1.shape == (batch, output_dim) and q2.shape == (batch, output_dim)
    assert jnp.allclose(q1, r1, atol=1e-5, rtol=1e-5)
    assert jnp.allclose(q2, r2, atol=1e-5, rtol=1e-5)

    # Exercise the tiled (multi-step, padded) path as well.
    big_batch = 300
    kb1, kb2 = jax.random.split(jax.random.PRNGKey(1))
    big_state = jax.random.normal(kb1, (big_batch, state_dim), dtype=jnp.float32)
    big_action = jax.random.normal(kb2, (big_batch, action_dim), dtype=jnp.float32)
    bq1, bq2 = clipped_critic_forward(big_state, big_action, packed)
    jax.block_until_ready((bq1, bq2))
    br1, br2 = reference_forward(big_state, big_action, params)
    assert jnp.allclose(bq1, br1, atol=1e-5, rtol=1e-5)
    assert jnp.allclose(bq2, br2, atol=1e-5, rtol=1e-5)

    print("KERNEL_OK")
</pallas_src>

<mosaic_0001>
module attributes {stable_mosaic.version = 11 : i64} {
  func.func @_clipped_critic_kernel(%arg0: i32, %arg1: memref<8x16xf32, #tpu.memory_space<vmem>>, %arg2: memref<16x64xf32, #tpu.memory_space<vmem>>, %arg3: memref<64x64xf32, #tpu.memory_space<vmem>>, %arg4: memref<2x64xf32, #tpu.memory_space<vmem>>, %arg5: memref<2x64xf32, #tpu.memory_space<vmem>>, %arg6: memref<2x1xf32, #tpu.memory_space<vmem>>, %arg7: memref<2x8xf32, #tpu.memory_space<vmem>>) attributes {dimension_semantics = [#tpu.dimension_semantics<parallel>], iteration_bounds = array<i64: 1>, scalar_prefetch = 0 : i64, scratch_operands = 0 : i64, tpu.core_type = #tpu.core_type<tc>, window_params = [{transform_indices = @transform_0, window_bounds = array<i64: 8, 16>}, {pipeline_mode = #tpu.pipeline_mode<synchronous>, transform_indices = @transform_1, window_bounds = array<i64: 16, 64>}, {pipeline_mode = #tpu.pipeline_mode<synchronous>, transform_indices = @transform_2, window_bounds = array<i64: 64, 64>}, {pipeline_mode = #tpu.pipeline_mode<synchronous>, transform_indices = @transform_3, window_bounds = array<i64: 2, 64>}, {pipeline_mode = #tpu.pipeline_mode<synchronous>, transform_indices = @transform_4, window_bounds = array<i64: 2, 64>}, {pipeline_mode = #tpu.pipeline_mode<synchronous>, transform_indices = @transform_5, window_bounds = array<i64: 2, 1>}, {transform_indices = @transform_6, window_bounds = array<i64: 2, 8>}]} {
    %c0 = arith.constant 0 : index
    %c0_0 = arith.constant 0 : index
    %0 = vector.load %arg5[%c0, %c0_0] : memref<2x64xf32, #tpu.memory_space<vmem>>, vector<2x64xf32>
    %1 = vector.extract_strided_slice %0 {offsets = [0, 0], sizes = [1, 64], strides = [1, 1]} : vector<2x64xf32> to vector<1x64xf32>
    %2 = vector.extract_strided_slice %0 {offsets = [1, 0], sizes = [1, 64], strides = [1, 1]} : vector<2x64xf32> to vector<1x64xf32>
    %c0_1 = arith.constant 0 : index
    %c0_2 = arith.constant 0 : index
    %3 = vector.load %arg1[%c0_1, %c0_2] : memref<8x16xf32, #tpu.memory_space<vmem>>, vector<8x16xf32>
    %c0_3 = arith.constant 0 : index
    %c0_4 = arith.constant 0 : index
    %4 = vector.load %arg2[%c0_3, %c0_4] : memref<16x64xf32, #tpu.memory_space<vmem>>, vector<16x64xf32>
    %cst = arith.constant dense<0.000000e+00> : vector<8x64xf32>
    %5 = tpu.matmul %3, %4, %cst {dimension_numbers = #tpu.dot_dimension_numbers<[1], [0], [0], [1], [0, 0, 1, 1], [], []>} : vector<8x16xf32>, vector<16x64xf32>, vector<8x64xf32> -> vector<8x64xf32>
    %6 = vector.broadcast %1 : vector<1x64xf32> to vector<8x64xf32>
    %7 = arith.addf %5, %6 : vector<8x64xf32>
    %cst_5 = arith.constant 0.000000e+00 : f32
    %8 = vector.broadcast %cst_5 : f32 to vector<8x64xf32>
    %9 = arith.maximumf %7, %8 : vector<8x64xf32>
    %c0_6 = arith.constant 0 : index
    %c0_7 = arith.constant 0 : index
    %10 = vector.load %arg3[%c0_6, %c0_7] : memref<64x64xf32, #tpu.memory_space<vmem>>, vector<64x64xf32>
    %cst_8 = arith.constant dense<0.000000e+00> : vector<8x64xf32>
    %11 = tpu.matmul %9, %10, %cst_8 {dimension_numbers = #tpu.dot_dimension_numbers<[1], [0], [0], [1], [0, 0, 1, 1], [], []>} : vector<8x64xf32>, vector<64x64xf32>, vector<8x64xf32> -> vector<8x64xf32>
    %12 = vector.broadcast %2 : vector<1x64xf32> to vector<8x64xf32>
    %13 = arith.addf %11, %12 : vector<8x64xf32>
    %cst_9 = arith.constant 0.000000e+00 : f32
    %14 = vector.broadcast %cst_9 : f32 to vector<8x64xf32>
    %15 = arith.maximumf %13, %14 : vector<8x64xf32>
    %c0_10 = arith.constant 0 : index
    %c0_11 = arith.constant 0 : index
    %16 = vector.load %arg4[%c0_10, %c0_11] : memref<2x64xf32, #tpu.memory_space<vmem>>, vector<2x64xf32>
    %cst_12 = arith.constant dense<0.000000e+00> : vector<2x8xf32>
    %17 = tpu.matmul %16, %15, %cst_12 {dimension_numbers = #tpu.dot_dimension_numbers<[1], [1], [0], [0], [0, 0, 1, 0], [], []>} : vector<2x64xf32>, vector<8x64xf32>, vector<2x8xf32> -> vector<2x8xf32>
    %c0_13 = arith.constant 0 : index
    %c0_14 = arith.constant 0 : index
    %18 = vector.load %arg6[%c0_13, %c0_14] : memref<2x1xf32, #tpu.memory_space<vmem>>, vector<2x1xf32>
    %19 = vector.broadcast %18 : vector<2x1xf32> to vector<2x8xf32>
    %20 = arith.addf %17, %19 : vector<2x8xf32>
    %c0_15 = arith.constant 0 : index
    %c0_16 = arith.constant 0 : index
    %21 = vector.load %arg7[%c0_15, %c0_16] : memref<2x8xf32, #tpu.memory_space<vmem>>, vector<2x8xf32>
    tpu.vector_store %arg7[%c0_15, %c0_16], %20 {strides = array<i32>} : memref<2x8xf32, #tpu.memory_space<vmem>>, vector<2x8xf32>,
    return
  }
  func.func @transform_0(%arg0: i32) -> (i32, i32) {
    %c0_i32 = arith.constant 0 : i32
    %c0_i32_0 = arith.constant 0 : i32
    return %arg0, %c0_i32 : i32, i32
  }
  func.func @transform_1(%arg0: i32) -> (i32, i32) {
    %c0_i32 = arith.constant 0 : i32
    %c0_i32_0 = arith.constant 0 : i32
    %c0_i32_1 = arith.constant 0 : i32
    return %c0_i32, %c0_i32_0 : i32, i32
  }
  func.func @transform_2(%arg0: i32) -> (i32, i32) {
    %c0_i32 = arith.constant 0 : i32
    %c0_i32_0 = arith.constant 0 : i32
    %c0_i32_1 = arith.constant 0 : i32
    return %c0_i32, %c0_i32_0 : i32, i32
  }
  func.func @transform_3(%arg0: i32) -> (i32, i32) {
    %c0_i32 = arith.constant 0 : i32
    %c0_i32_0 = arith.constant 0 : i32
    %c0_i32_1 = arith.constant 0 : i32
    return %c0_i32, %c0_i32_0 : i32, i32
  }
  func.func @transform_4(%arg0: i32) -> (i32, i32) {
    %c0_i32 = arith.constant 0 : i32
    %c0_i32_0 = arith.constant 0 : i32
    %c0_i32_1 = arith.constant 0 : i32
    return %c0_i32, %c0_i32_0 : i32, i32
  }
  func.func @transform_5(%arg0: i32) -> (i32, i32) {
    %c0_i32 = arith.constant 0 : i32
    %c0_i32_0 = arith.constant 0 : i32
    %c0_i32_1 = arith.constant 0 : i32
    return %c0_i32, %c0_i32_0 : i32, i32
  }
  func.func @transform_6(%arg0: i32) -> (i32, i32) {
    %c0_i32 = arith.constant 0 : i32
    %c0_i32_0 = arith.constant 0 : i32
    return %c0_i32, %arg0 : i32, i32
  }
}

</mosaic_0001>

<bundles_post_ra>
// kernel: tpu_custom_call.1
= control target key start
LH: loop header
LB: loop body
LE: loop exit
PB: predicated region body
PF: predicated region fallthrough
CT: control target
= control target key end

     0   :  { %11 = vsyncpa [#allocation3], 0  ;;  %s547_s0 = inlined_call_operand.hbm [shape: f32[8,16], index: 0, kind: input, shape index: {}]   ;;  %s548_s1 = inlined_call_operand.hbm [shape: f32[16,64], index: 1, kind: input, shape index: {}]   ;;  %s549_s2 = inlined_call_operand.hbm [shape: f32[64,64], index: 2, kind: input, shape index: {}]   ;;  %s550_s3 = inlined_call_operand.vmem [shape: f32[2,64], index: 3, kind: input, shape index: {}]   ;;  %s551_s4 = inlined_call_operand.vmem [shape: f32[2,64], index: 4, kind: input, shape index: {}]   ;;  %s552_s5 = inlined_call_operand.vmem [shape: f32[2,1], index: 5, kind: input, shape index: {}]   ;;  %s553_s6 = inlined_call_operand.hbm [shape: f32[2,8], index: 6, kind: output, shape index: {}]  }
   0x1   :  { %12 = vsyncpa [#allocation6], 0 }
   0x2   :  { %13 = vsyncpa [#allocation4], 0  ;;  %s479_s21 = smov [#allocation5]  }
   0x3   :  { %s29_s22 = sshll.u32 %s479_s21, 4  ;;  %s30_s22 = int_to_ptr.vmem [resolvable:$true] %s29_s22 }
   0x4   :  { %s401_s23 = scalar_lea.vmem %s30_s22, 256  ;;  %p406_p1 = scmp.lt.s32.totalorder %s30_s22, %s30_s22 }
   0x5   :  { %p402_p0 = scmp.ne.s32.totalorder %s30_s22, %s401_s23  ;;  %p407_p2 = scmp.lt.s32.totalorder %s401_s23, %s401_s23 }
   0x7   :  { %p408_p3 = por %p407_p2, %p406_p1 }
   0x9   :  { %p409_p4 = pnand %p408_p3, %p402_p0 }
   0xb   :  { %412 = shalt.err (!%p409_p4)
}
   0xc   :  { %s480_s24 = smov 128   ;;  %s481_s25 = smov 8  }
   0xd   :  { %35 = dma.hbm_to_vmem [thread:$0]  %s548_s1, 256, %s30_s22, [#allocation6], %s480_s24, %s480_s24, %s481_s25  }
   0xe   :  { %s482_s28 = smov [#allocation2]   ;;  %s483_s30 = smov [#allocation7]  }
   0xf   :  { %s20_s29 = sshll.u32 %s482_s28, 4  ;;  %s41_s7 = sshll.u32 %s483_s30, 4  ;;  %s21_s29 = int_to_ptr.vmem [resolvable:$true] %s20_s29  ;;  %s42_s7 = int_to_ptr.vmem [resolvable:$true] %s41_s7 }
  0x10   :  { %s421_s8 = scalar_lea.vmem %s21_s29, 128  ;;  %p426_p6 = scmp.lt.s32.totalorder %s21_s29, %s21_s29 }
  0x11   :  { %p422_p5 = scmp.ne.s32.totalorder %s21_s29, %s421_s8  ;;  %p427_p7 = scmp.lt.s32.totalorder %s421_s8, %s421_s8 }
  0x13   :  { %p428_p8 = por %p427_p7, %p426_p6 }
  0x15   :  { %p429_p9 = pnand %p428_p8, %p422_p5 }
  0x17   :  { %432 = shalt.err (!%p429_p9)
}
  0x18   :  { %23 = dma.hbm_to_vmem [thread:$0]  %s547_s0, 128, %s21_s29, [#allocation3]  }
  0x19   :  { %s441_s11 = scalar_lea.vmem %s42_s7, 1024  ;;  %p446_p11 = scmp.lt.s32.totalorder %s42_s7, %s42_s7 }
  0x1a   :  { %p442_p10 = scmp.ne.s32.totalorder %s42_s7, %s441_s11  ;;  %p447_p12 = scmp.lt.s32.totalorder %s441_s11, %s441_s11 }
  0x1c   :  { %p448_p13 = por %p447_p12, %p446_p11 }
  0x1e   :  { %p449_p0 = pnand %p448_p13, %p442_p10 }
  0x20   :  { %452 = shalt.err (!%p449_p0)
}
  0x21   :  { %47 = dma.hbm_to_vmem [thread:$0]  %s549_s2, 1024, %s42_s7, [#allocation6], %s480_s24, %s480_s24, %s481_s25  }
  0x22   :  { %473 = dma.done.wait [#allocation3], 128  }
  0x23   :  { %474 = vsyncadd [#allocation3], 4294967168 }
  0x24   :  { %475 = dma.done.wait [#allocation6], 1280  }
  0x25   :  { %476 = vsyncadd [#allocation6], 4294966016  ;;  %v484_v0 = vmov 0.0   ;;  %vm485_vm0 = vmmov 0   ;;  %v66_v1 = vld [vmem:[#allocation5 + $0x8] sm:$0xff]  ;;  %v65_v2 = vld [vmem:[#allocation5] sm:$0xff]  ;;  %v67_v12 = vlaneseq }
  0x26   :  { %352 = vmatprep.subr.mxu0 %v484_v0  ;;  %356 = vmatprep.mubr.msk.f32.mxu0 %vm485_vm0, %v484_v0  ;;  %v64_v3 = vld [vmem:[#allocation2] sm:$0xff]  ;;  %vm71_vm1 = vcmask 130048   ;;  %v153_v4 = vld [vmem:[#allocation7 + $0x38] sm:$0xff]  ;;  %v152_v5 = vld [vmem:[#allocation7 + $0x30] sm:$0xff]  ;;  %vm158_vm2 = vcmask 523264   ;;  %v486_v22 = vmov 0  }
  0x27   :  { %359 = vmatprep.subr.mxu1 %v484_v0  ;;  %375 = vmatprep.mubr.msk.f32.mxu1 %vm485_vm0, %v484_v0  ;;  %v151_v6 = vld [vmem:[#allocation7 + $0x28] sm:$0xff]  ;;  %v150_v7 = vld [vmem:[#allocation7 + $0x20] sm:$0xff]  ;;  %v149_v8 = vld [vmem:[#allocation7 + $0x18] sm:$0xff]  ;;  %v68_v13 = vshrl.u32 %v67_v12, 7  ;;  %s487_s16 = smov [#allocation8]   ;;  %vm316_vm3 = vcmask 58368  }
  0x28   :  { %353 = vmatpush3.msra.mxu0 %v66_v1  ;;  %360 = vmatpush3.msra.mxu1 %v153_v4  ;;  %v148_v9 = vld [vmem:[#allocation7 + $0x10] sm:$0xff]  ;;  %v147_v10 = vld [vmem:[#allocation7 + $0x8] sm:$0xff]  ;;  %v146_v11 = vld [vmem:[#allocation7] sm:$0xff]  ;;  %s324_s17 = sshll.u32 %s487_s16, 4  ;;  %s325_s17 = int_to_ptr.vmem [resolvable:$true] %s324_s17 }
  0x29   :  { %354 = vmatprep.subr.mxu0 %v484_v0  ;;  %361 = vmatprep.subr.mxu1 %v484_v0  ;;  %v69_v14 = vsub.s32 0, %v68_v13  ;;  %v63_v15 = vld [vmem:[%s551_s4] sm:$0x3]  ;;  %v156_v23 = vsub.s32 1, %v68_v13  ;;  %p458_p2 = scmp.lt.s32.totalorder %s325_s17, %s325_s17 }
  0x2a   :  { %355 = vmatpush3.msra.mxu0 %v65_v2  ;;  %362 = vmatpush3.msra.mxu1 %v152_v5  ;;  %v234_v21 = vld [vmem:[%s552_s5] sm:$0x3]  ;;  %s453_s5 = scalar_lea.vmem %s325_s17, 32 }
  0x2b   :  { %357 = vmatmul.mubr.msk.f32.vlgmr.msra.gmra.mxu0 %vm71_vm1, %v64_v3  ;;  %363 = vmatprep.subr.mxu1 %v484_v0  ;;  %v70_v16 = vrot.slane %v63_v15, %v69_v14  ;;  %v157_v24 = vrot.slane %v63_v15, %v156_v23  ;;  %v233_v29 = vld [vmem:[%s550_s3] sm:$0x3]  ;;  %p454_p1 = scmp.ne.s32.totalorder %s325_s17, %s453_s5  ;;  %p459_p3 = scmp.lt.s32.totalorder %s453_s5, %s453_s5 }
  0x2c   :  { %378 = vmatprep.subr.mxu0 %v484_v0  ;;  %364 = vmatpush3.msra.mxu1 %v151_v6 }
  0x2d   :  { %380 = vmatprep.mubr.msk.f32.mxu0 %vm485_vm0, %v484_v0  ;;  %365 = vmatprep.subr.mxu1 %v484_v0  ;;  %p460_p4 = por %p459_p3, %p458_p2 }
  0x2e   :  { %366 = vmatpush3.msra.mxu1 %v150_v7  ;;  %392 = vset.pattern.permute.xlu0 %v486_v22 }
  0x2f   :  { %367 = vmatprep.subr.mxu1 %v484_v0  ;;  %237 = vperm.xlu0 %392, %v234_v21   ;;  %p461_p5 = pnand %p460_p4, %p454_p1 }
  0x30   :  { %368 = vmatpush3.msra.mxu1 %v149_v8 }
  0x31   :  { %369 = vmatprep.subr.mxu1 %v484_v0 }
  0x32   :  { %370 = vmatpush3.msra.mxu1 %v148_v9 }
  0x33   :  { %371 = vmatprep.subr.mxu1 %v484_v0 }
  0x34   :  { %372 = vmatpush3.msra.mxu1 %v147_v10 }
  0x35   :  { %373 = vmatprep.subr.mxu1 %v484_v0 }
  0x36   :  { %374 = vmatpush3.msra.mxu1 %v146_v11 }
  0xaa   :  { %v238_v30 = vpop.permute.xlu0 %237 }
  0xeb   :  { %v141_v17 = vpop.f32.mrf.mxu0 }
  0xec   :  { %v142_v18 = vadd.f32 %v141_v17, %v70_v16 }
  0xed   :  { %v358_v19 = vpop.f32.mrf.mxu0 }
  0xee   :  { %v145_v20 = vmax.f32 %v142_v18, 0.0 }
  0xf0   :  { %376 = vmatmul.mubr.msk.f32.vlgmr.msra.gmra.mxu1 %vm158_vm2, %v145_v20 }
 0x1b0   :  { %v228_v25 = vpop.f32.mrf.mxu1 }
 0x1b1   :  { %v229_v26 = vadd.f32 %v228_v25, %v157_v24 }
 0x1b2   :  { %v377_v27 = vpop.f32.mrf.mxu1 }
 0x1b3   :  { %v232_v28 = vmax.f32 %v229_v26, 0.0 }
 0x1b5   :  { %379 = vmatpush3.xpose.msk.msra.mxu0 %vm158_vm2, %v232_v28 }
 0x1b8   :  { %381 = vmatmul.mubr.msk.f32.vlgmr.msra.gmra.mxu0 %vm158_vm2, %v233_v29 }
 0x278   :  { %v312_v31 = vpop.f32.mrf.mxu0 }
 0x279   :  { %v313_v32 = vadd.f32 %v312_v31, %v238_v30 }
 0x27a   :  { %v382_v33 = vpop.f32.mrf.mxu0 }
 0x27b   :  { %317 = vst.msk [vmem:[#allocation8] sm:$0x3] %vm316_vm3, %v313_v32 }
 0x27c   :  { %464 = shalt.err (!%p461_p5)
}
 0x27d   :  { %327 = dma.vmem_to_hbm [thread:$0]  %s325_s17, 32, %s553_s6, [#allocation4]  }
 0x27e   :  { %477 = dma.done.wait [#allocation4], 32  }
 0x27f   :  { %478 = vsyncadd [#allocation4], 4294967264 }
 0x280   :  { %331 = vsyncpa [#allocation3], 1 }
 0x281   :  { %332 = vsyncpa [#allocation6], 1 }
 0x282   :  { %333 = vsyncpa [#allocation4], 1 }

</bundles_post_ra>
